<compile_context>
chip_gen: v6e
topology: v6e:2x2x1
jax: 0.10.0
libtpu: 0.0.40
codegen_flags: <defaults>
</compile_context>

<pallas_src>
import jax
import jax.numpy as jnp
from jax.experimental import pallas as pl
from jax.experimental.pallas import tpu as pltpu

# ---- static problem sizes (small, consistent with the module) -------------
B, CIN, H, W = 2, 4, 16, 16
COUT = 8
KH = KW = 3
K2C = KH * KW * CIN          # 36  im2col contraction length
K2C_PAD = 40                 # padded to a multiple of 8 (aligned sublanes)
HW = H * W                   # 256 (lane-dense spatial axis)
BHW = B * HW                 # 512 (batch folded into lanes)
NUM_CLASSES = 10

# packed parameter slab layout, f32 (16, 64):
#   [0:8 ,  0:40]  w1 flattened (ci,kh,kw), zero-padded cols 36:40
#   [0:8 , 40:41]  b1 (per-out-channel column -> broadcasts over lanes)
#   [0:1 , 44:54]  b2
#   [1:3 , 44:54]  target (B, NUM_CLASSES)
#   [8:16,  0:10]  w2 (COUT, NUM_CLASSES)
SLAB_R, SLAB_C = 16, 64


# ---------------------------------------------------------------------------
# Single fused, gridless kernel: conv(+bias+ReLU) as one im2col matmul over the
# batch-folded lane axis, mean(out1) loss, GAP -> Linear -> MSE head.
# ---------------------------------------------------------------------------
def fused_kernel(pt_ref, slab_ref, out1_ref, loss_ref, out2_ref):
    # pt_ref  : (K2C_PAD, B*HW) = (40, 512) im2col patches, lane-dense
    # slab_ref: (16, 64)        packed params + target
    # out1_ref: (B, COUT, HW)   conv+ReLU output, lane-dense (256 lanes)
    # loss_ref: (1, 1) VMEM     mean(out1)
    # out2_ref: (1, 1) VMEM     MSE(linear(pool(out1)), target)
    w1 = slab_ref[0:COUT, 0:K2C_PAD]                        # (8, 40)
    b1 = slab_ref[0:COUT, K2C_PAD:K2C_PAD + 1]              # (8, 1)
    b2 = slab_ref[0:1, 44:44 + NUM_CLASSES]                 # (1, 10)
    tgt = slab_ref[1:1 + B, 44:44 + NUM_CLASSES]            # (2, 10)
    w2 = slab_ref[COUT:2 * COUT, 0:NUM_CLASSES]             # (8, 10)

    # Whole conv for both batch elements: ONE MXU matmul (8,40)x(40,512).
    acc = jnp.dot(w1, pt_ref[...], preferred_element_type=jnp.float32)
    acc = jnp.maximum(acc + b1, 0.0)                        # (8, 512) bias+ReLU

    inv_hw = jnp.float32(1.0 / HW)
    pooled_sum = jnp.zeros((COUT, 1), jnp.float32)
    sq_err = jnp.zeros((1, 1), jnp.float32)
    for b in range(B):                                      # B=2, fully unrolled
        ab = acc[:, b * HW:(b + 1) * HW]                    # (8,256) 128-aligned slice
        out1_ref[b] = ab                                    # lane-dense store

        # global average pool (lane reduce); reused for the mean(out1) loss
        pooled = jnp.sum(ab, axis=1, keepdims=True) * inv_hw        # (8, 1)
        pooled_sum = pooled_sum + pooled

        # tiny head on VPU/XLU only (no MXU push for a 1-row matmul)
        logits = jnp.sum(pooled * w2, axis=0, keepdims=True) + b2   # (1, 10)
        diff = logits - tgt[b:b + 1, :]
        sq_err = sq_err + jnp.sum(diff * diff, axis=1, keepdims=True)

    loss_ref[...] = (jnp.sum(pooled_sum, axis=0, keepdims=True)
                     * jnp.float32(1.0 / (B * COUT)))
    out2_ref[...] = sq_err * jnp.float32(1.0 / (B * NUM_CLASSES))


# ---------------------------------------------------------------------------
# Wrapper: im2col (padding folded in, batch folded into lanes), one packed
# parameter slab, single fused pallas_call.  out1 reshapes back to NCHW.
# ---------------------------------------------------------------------------
def combined_forward(x_nchw, target, params):
    w1, b1, w2, b2 = params            # w1: (COUT, CIN, KH, KW)  (PyTorch OIHW)
    x = x_nchw.astype(jnp.float32)
    target = target.astype(jnp.float32)

    # im2col in the wrapper; may be fused into the pallas operand (allow_input_fusion)
    #   pt[ci*9 + kh*3 + kw, b*HW + h*W + w] = x_padded[b, ci, h+kh, w+kw]
    xp = jnp.pad(x, ((0, 0), (0, 0), (1, 1), (1, 1)))
    taps = [xp[:, :, kh:kh + H, kw:kw + W]
            for kh in range(KH) for kw in range(KW)]               # 9 x (B,CIN,H,W)
    pt = jnp.stack(taps, axis=2).reshape(B, K2C, HW)               # (B, 36, 256)
    pt = jnp.transpose(pt, (1, 0, 2)).reshape(K2C, BHW)            # (36, 512)
    pt = jnp.pad(pt, ((0, K2C_PAD - K2C), (0, 0)))                 # (40, 512)

    # one padded f32 slab for all tiny params + target -> a single extra DMA
    slab = jnp.zeros((SLAB_R, SLAB_C), jnp.float32)
    slab = slab.at[0:COUT, 0:K2C].set(w1.reshape(COUT, K2C))
    slab = slab.at[0:COUT, K2C_PAD].set(b1)
    slab = slab.at[0, 44:44 + NUM_CLASSES].set(b2)
    slab = slab.at[1:1 + B, 44:44 + NUM_CLASSES].set(target)
    slab = slab.at[COUT:2 * COUT, 0:NUM_CLASSES].set(w2)

    flops = 2 * COUT * K2C_PAD * BHW                               # ~3.3e5
    bytes_accessed = 4 * (K2C_PAD * BHW + SLAB_R * SLAB_C
                          + B * COUT * HW + 2)                     # ~1.0e5

    out1_flat, loss, out2 = pl.pallas_call(
        fused_kernel,
        out_shape=(
            jax.ShapeDtypeStruct((B, COUT, HW), jnp.float32),      # lane-dense out1
            jax.ShapeDtypeStruct((1, 1), jnp.float32),             # loss
            jax.ShapeDtypeStruct((1, 1), jnp.float32),             # out2 (MSE)
        ),
        in_specs=[
            pl.BlockSpec(memory_space=pltpu.MemorySpace.VMEM),     # pt
            pl.BlockSpec(memory_space=pltpu.MemorySpace.VMEM),     # param slab
        ],
        out_specs=(
            pl.BlockSpec(memory_space=pltpu.MemorySpace.VMEM),
            pl.BlockSpec(memory_space=pltpu.MemorySpace.VMEM),
            pl.BlockSpec(memory_space=pltpu.MemorySpace.VMEM),
        ),
        compiler_params=pltpu.CompilerParams(
            allow_input_fusion=[True, False]),                     # fuse im2col producer
        cost_estimate=pl.CostEstimate(flops=flops, transcendentals=0,
                                      bytes_accessed=bytes_accessed),
    )(pt, slab)

    out1 = out1_flat.reshape(B, COUT, H, W)    # free reshape; already NCHW order
    return out1, loss[0, 0], out2[0, 0]


def init_params(key):
    k1, k2, k3, k4 = jax.random.split(key, 4)
    w1 = 0.1 * jax.random.normal(k1, (COUT, CIN, KH, KW), dtype=jnp.float32)
    b1 = 0.1 * jax.random.normal(k2, (COUT,), dtype=jnp.float32)
    w2 = 0.1 * jax.random.normal(k3, (COUT, NUM_CLASSES), dtype=jnp.float32)
    b2 = 0.1 * jax.random.normal(k4, (NUM_CLASSES,), dtype=jnp.float32)
    return w1, b1, w2, b2


def _reference(x, target, params):
    """Pure-JAX reference of the same forward pass (sanity check)."""
    w1, b1, w2, b2 = params
    out1 = jax.lax.conv_general_dilated(
        x, w1, window_strides=(1, 1), padding="SAME",
        dimension_numbers=("NCHW", "OIHW", "NCHW"))
    out1 = jnp.maximum(out1 + b1.reshape(1, COUT, 1, 1), 0.0)
    loss = jnp.mean(out1)
    pooled = jnp.mean(out1, axis=(2, 3))
    logits = pooled @ w2 + b2
    out2 = jnp.mean((logits - target) ** 2)
    return out1, loss, out2


if __name__ == "__main__":
    key = jax.random.PRNGKey(0)
    kx, kt, kp = jax.random.split(key, 3)
    x = jax.random.normal(kx, (B, CIN, H, W), dtype=jnp.float32)       # NCHW
    target = jax.random.normal(kt, (B, NUM_CLASSES), dtype=jnp.float32)
    params = init_params(kp)

    out1, loss, out2 = jax.jit(combined_forward)(x, target, params)
    jax.block_until_ready((out1, loss, out2))

    assert out1.shape == (B, COUT, H, W)
    assert loss.shape == ()
    assert out2.shape == ()

    # Sanity check against a pure-JAX reference (loose tol: MXU default precision)
    r1, rl, r2 = _reference(x, target, params)
    assert bool(jnp.allclose(out1, r1, rtol=2e-2, atol=2e-2))
    assert bool(jnp.allclose(loss, rl, rtol=2e-2, atol=2e-2))
    assert bool(jnp.allclose(out2, r2, rtol=2e-2, atol=2e-2))

    print("KERNEL_OK")
</pallas_src>

<mosaic_0001>
module attributes {stable_mosaic.version = 11 : i64} {
  func.func @fused_kernel(%arg0: memref<40x512xf32, #tpu.memory_space<vmem>>, %arg1: memref<16x64xf32, #tpu.memory_space<vmem>>, %arg2: memref<2x8x256xf32, #tpu.memory_space<vmem>>, %arg3: memref<1x1xf32, #tpu.memory_space<vmem>>, %arg4: memref<1x1xf32, #tpu.memory_space<vmem>>) attributes {dimension_semantics = [], scalar_prefetch = 0 : i64, scratch_operands = 0 : i64, tpu.core_type = #tpu.core_type<tc>} {
    %c0 = arith.constant 0 : index
    %c0_0 = arith.constant 0 : index
    %0 = vector.load %arg1[%c0, %c0_0] : memref<16x64xf32, #tpu.memory_space<vmem>>, vector<8x40xf32>
    %c0_1 = arith.constant 0 : index
    %c40 = arith.constant 40 : index
    %1 = vector.load %arg1[%c0_1, %c40] : memref<16x64xf32, #tpu.memory_space<vmem>>, vector<8x1xf32>
    %c0_2 = arith.constant 0 : index
    %c44 = arith.constant 44 : index
    %2 = vector.load %arg1[%c0_2, %c44] : memref<16x64xf32, #tpu.memory_space<vmem>>, vector<1x10xf32>
    %c1 = arith.constant 1 : index
    %c44_3 = arith.constant 44 : index
    %3 = vector.load %arg1[%c1, %c44_3] : memref<16x64xf32, #tpu.memory_space<vmem>>, vector<2x10xf32>
    %c8 = arith.constant 8 : index
    %c0_4 = arith.constant 0 : index
    %4 = vector.load %arg1[%c8, %c0_4] : memref<16x64xf32, #tpu.memory_space<vmem>>, vector<8x10xf32>
    %c0_5 = arith.constant 0 : index
    %c0_6 = arith.constant 0 : index
    %5 = vector.load %arg0[%c0_5, %c0_6] : memref<40x512xf32, #tpu.memory_space<vmem>>, vector<40x512xf32>
    %cst = arith.constant dense<0.000000e+00> : vector<8x512xf32>
    %6 = tpu.matmul %0, %5, %cst {dimension_numbers = #tpu.dot_dimension_numbers<[1], [0], [0], [1], [0, 0, 1, 1], [], []>} : vector<8x40xf32>, vector<40x512xf32>, vector<8x512xf32> -> vector<8x512xf32>
    %7 = vector.broadcast %1 : vector<8x1xf32> to vector<8x512xf32>
    %8 = arith.addf %6, %7 : vector<8x512xf32>
    %cst_7 = arith.constant 0.000000e+00 : f32
    %9 = vector.broadcast %cst_7 : f32 to vector<8x512xf32>
    %10 = arith.maximumf %8, %9 : vector<8x512xf32>
    %cst_8 = arith.constant 0.000000e+00 : f32
    %11 = vector.broadcast %cst_8 : f32 to vector<8x1xf32>
    %cst_9 = arith.constant 0.000000e+00 : f32
    %12 = vector.broadcast %cst_9 : f32 to vector<1x1xf32>
    %13 = vector.extract_strided_slice %10 {offsets = [0, 0], sizes = [8, 256], strides = [1, 1]} : vector<8x512xf32> to vector<8x256xf32>
    %c0_10 = arith.constant 0 : index
    %c0_11 = arith.constant 0 : index
    %c0_12 = arith.constant 0 : index
    %14 = vector.load %arg2[%c0_10, %c0_11, %c0_12] : memref<2x8x256xf32, #tpu.memory_space<vmem>>, vector<1x8x256xf32>
    %15 = vector.shape_cast %14 : vector<1x8x256xf32> to vector<8x256xf32>
    %16 = vector.shape_cast %13 : vector<8x256xf32> to vector<1x8x256xf32>
    tpu.vector_store %arg2[%c0_10, %c0_11, %c0_12], %16 {strides = array<i32>} : memref<2x8x256xf32, #tpu.memory_space<vmem>>, vector<1x8x256xf32>,
    %cst_13 = arith.constant dense<0.000000e+00> : vector<8xf32>
    %17 = vector.multi_reduction <add>, %13, %cst_13 [1] : vector<8x256xf32> to vector<8xf32>
    %18 = vector.shape_cast %17 : vector<8xf32> to vector<8x1xf32>
    %cst_14 = arith.constant 3.906250e-03 : f32
    %19 = vector.broadcast %cst_14 : f32 to vector<8x1xf32>
    %20 = arith.mulf %18, %19 : vector<8x1xf32>
    %21 = arith.addf %11, %20 : vector<8x1xf32>
    %22 = vector.broadcast %20 : vector<8x1xf32> to vector<8x10xf32>
    %23 = arith.mulf %22, %4 : vector<8x10xf32>
    %cst_15 = arith.constant dense<0.000000e+00> : vector<10xf32>
    %24 = vector.multi_reduction <add>, %23, %cst_15 [0] : vector<8x10xf32> to vector<10xf32>
    %25 = vector.shape_cast %24 : vector<10xf32> to vector<1x10xf32>
    %26 = arith.addf %25, %2 : vector<1x10xf32>
    %27 = vector.extract_strided_slice %3 {offsets = [0, 0], sizes = [1, 10], strides = [1, 1]} : vector<2x10xf32> to vector<1x10xf32>
    %28 = arith.subf %26, %27 : vector<1x10xf32>
    %29 = arith.mulf %28, %28 : vector<1x10xf32>
    %cst_16 = arith.constant dense<0.000000e+00> : vector<1xf32>
    %30 = vector.multi_reduction <add>, %29, %cst_16 [1] : vector<1x10xf32> to vector<1xf32>
    %31 = vector.shape_cast %30 : vector<1xf32> to vector<1x1xf32>
    %32 = arith.addf %12, %31 : vector<1x1xf32>
    %33 = vector.extract_strided_slice %10 {offsets = [0, 256], sizes = [8, 256], strides = [1, 1]} : vector<8x512xf32> to vector<8x256xf32>
    %c1_17 = arith.constant 1 : index
    %c0_18 = arith.constant 0 : index
    %c0_19 = arith.constant 0 : index
    %34 = vector.load %arg2[%c1_17, %c0_18, %c0_19] : memref<2x8x256xf32, #tpu.memory_space<vmem>>, vector<1x8x256xf32>
    %35 = vector.shape_cast %34 : vector<1x8x256xf32> to vector<8x256xf32>
    %36 = vector.shape_cast %33 : vector<8x256xf32> to vector<1x8x256xf32>
    tpu.vector_store %arg2[%c1_17, %c0_18, %c0_19], %36 {strides = array<i32>} : memref<2x8x256xf32, #tpu.memory_space<vmem>>, vector<1x8x256xf32>,
    %cst_20 = arith.constant dense<0.000000e+00> : vector<8xf32>
    %37 = vector.multi_reduction <add>, %33, %cst_20 [1] : vector<8x256xf32> to vector<8xf32>
    %38 = vector.shape_cast %37 : vector<8xf32> to vector<8x1xf32>
    %cst_21 = arith.constant 3.906250e-03 : f32
    %39 = vector.broadcast %cst_21 : f32 to vector<8x1xf32>
    %40 = arith.mulf %38, %39 : vector<8x1xf32>
    %41 = arith.addf %21, %40 : vector<8x1xf32>
    %42 = vector.broadcast %40 : vector<8x1xf32> to vector<8x10xf32>
    %43 = arith.mulf %42, %4 : vector<8x10xf32>
    %cst_22 = arith.constant dense<0.000000e+00> : vector<10xf32>
    %44 = vector.multi_reduction <add>, %43, %cst_22 [0] : vector<8x10xf32> to vector<10xf32>
    %45 = vector.shape_cast %44 : vector<10xf32> to vector<1x10xf32>
    %46 = arith.addf %45, %2 : vector<1x10xf32>
    %47 = vector.extract_strided_slice %3 {offsets = [1, 0], sizes = [1, 10], strides = [1, 1]} : vector<2x10xf32> to vector<1x10xf32>
    %48 = arith.subf %46, %47 : vector<1x10xf32>
    %49 = arith.mulf %48, %48 : vector<1x10xf32>
    %cst_23 = arith.constant dense<0.000000e+00> : vector<1xf32>
    %50 = vector.multi_reduction <add>, %49, %cst_23 [1] : vector<1x10xf32> to vector<1xf32>
    %51 = vector.shape_cast %50 : vector<1xf32> to vector<1x1xf32>
    %52 = arith.addf %32, %51 : vector<1x1xf32>
    %cst_24 = arith.constant dense<0.000000e+00> : vector<1xf32>
    %53 = vector.multi_reduction <add>, %41, %cst_24 [0] : vector<8x1xf32> to vector<1xf32>
    %54 = vector.shape_cast %53 : vector<1xf32> to vector<1x1xf32>
    %cst_25 = arith.constant 6.250000e-02 : f32
    %55 = vector.broadcast %cst_25 : f32 to vector<1x1xf32>
    %56 = arith.mulf %54, %55 : vector<1x1xf32>
    %c0_26 = arith.constant 0 : index
    %c0_27 = arith.constant 0 : index
    %57 = vector.load %arg3[%c0_26, %c0_27] : memref<1x1xf32, #tpu.memory_space<vmem>>, vector<1x1xf32>
    tpu.vector_store %arg3[%c0_26, %c0_27], %56 {strides = array<i32>} : memref<1x1xf32, #tpu.memory_space<vmem>>, vector<1x1xf32>,
    %cst_28 = arith.constant 5.000000e-02 : f32
    %58 = vector.broadcast %cst_28 : f32 to vector<1x1xf32>
    %59 = arith.mulf %52, %58 : vector<1x1xf32>
    %c0_29 = arith.constant 0 : index
    %c0_30 = arith.constant 0 : index
    %60 = vector.load %arg4[%c0_29, %c0_30] : memref<1x1xf32, #tpu.memory_space<vmem>>, vector<1x1xf32>
    tpu.vector_store %arg4[%c0_29, %c0_30], %59 {strides = array<i32>} : memref<1x1xf32, #tpu.memory_space<vmem>>, vector<1x1xf32>,
    return
  }
}

</mosaic_0001>

<bundles_post_ra>
// kernel: combined_forward.2
= control target key start
LH: loop header
LB: loop body
LE: loop exit
PB: predicated region body
PF: predicated region fallthrough
CT: control target
= control target key end

     0   :  { %s719_s0 = inlined_call_operand.vmem [shape: f32[16,64], index: 0, kind: input, shape index: {}]   ;;  %s720_s1 = inlined_call_operand.vmem [shape: f32[36,512], index: 1, kind: input, shape index: {}]   ;;  %s721_s2 = inlined_call_operand.<no memory space> [shape: f32[], index: 2, kind: input, shape index: {}]   ;;  %s722_s3 = inlined_call_operand.vmem [shape: f32[2,8,256], index: 3, kind: output, shape index: {0}]   ;;  %s723_s4 = inlined_call_operand.hbm [shape: f32[1,1], index: 4, kind: output, shape index: {1}]   ;;  %s724_s5 = inlined_call_operand.hbm [shape: f32[1,1], index: 5, kind: output, shape index: {2}]  }
   0x1   :  { %v11_v0 = vstv %s721_s2 }
   0x2   :  { %12 = vsyncpa [#allocation8], 0  ;;  %v194_v1 = vlaneseq  ;;  %v589_v2 = vmov 0.0   ;;  %v590_v4 = vmov 40   ;;  %v532_v5 = vld [vmem:[%s720_s1 + $0x88] sm:$0xff]  ;;  %v534_v7 = vld [vmem:[%s720_s1 + $0x98] sm:$0xff] }
   0x3   :  { %332 = vmatprep.mubr.f32.mxu0 %v589_v2  ;;  %403 = vmatprep.mubr.f32.mxu1 %v589_v2  ;;  %v531_v8 = vld [vmem:[%s720_s1 + $0x80] sm:$0xff]  ;;  %v533_v9 = vld [vmem:[%s720_s1 + $0x90] sm:$0xff]  ;;  %v528_v15 = vld [vmem:[%s720_s1 + $0x68] sm:$0xff] }
   0x4   :  { %v195_v3 = vshrl.u32 %v194_v1, 7  ;;  %544 = vset.pattern.permute.xlu0 %v590_v4  ;;  %v236_v10 = vld [vmem:[%s719_s0] sm:$0xff]  ;;  %v530_v16 = vld [vmem:[%s720_s1 + $0x78] sm:$0xff] }
   0x5   :  { %262 = vperm.xlu0 %544, %v236_v10  }
   0x6   :  { %v196_v6 = vadd.s32 32, %v195_v3 }
   0x8   :  { %vm197_vm0 = vcmp.lt.s32.totalorder %v196_v6, 36 }
   0x9   :  { %v209_v11 = vsel %vm197_vm0, %v532_v5, %v11_v0  ;;  %v231_v12 = vsel %vm197_vm0, %v534_v7, %v11_v0  ;;  %v198_v13 = vsel %vm197_vm0, %v531_v8, %v11_v0  ;;  %v220_v14 = vsel %vm197_vm0, %v533_v9, %v11_v0 }
   0xa   :  { %13 = vsyncpa [#allocation10], 0  ;;  %290 = vmatprep.subr.mxu0 %v209_v11  ;;  %361 = vmatprep.subr.mxu1 %v231_v12  ;;  %v527_v17 = vld [vmem:[%s720_s1 + $0x60] sm:$0xff]  ;;  %v529_v18 = vld [vmem:[%s720_s1 + $0x70] sm:$0xff]  ;;  %vm265_vm1 = vcmask 326656   ;;  %s591_s12 = smov 84  }
   0xb   :  { %291 = vmatpush1.msra.mxu0 %v198_v13  ;;  %362 = vmatpush1.msra.mxu1 %v220_v14  ;;  %v524_v19 = vld [vmem:[%s720_s1 + $0x48] sm:$0xff]  ;;  %v526_v20 = vld [vmem:[%s720_s1 + $0x58] sm:$0xff]  ;;  %v523_v21 = vld [vmem:[%s720_s1 + $0x40] sm:$0xff]  ;;  %vm422_vm2 = vcmask 80896   ;;  %vm480_vm3 = vcmask 0   ;;  %vm441_vm4 = vcmask 73728  }
   0xc   :  { %292 = vmatprep.subr.mxu0 %v528_v15  ;;  %363 = vmatprep.subr.mxu1 %v530_v16  ;;  %v525_v22 = vld [vmem:[%s720_s1 + $0x50] sm:$0xff]  ;;  %v520_v23 = vld [vmem:[%s720_s1 + $0x28] sm:$0xff]  ;;  %v522_v24 = vld [vmem:[%s720_s1 + $0x38] sm:$0xff] }
   0xd   :  { %293 = vmatpush1.msra.mxu0 %v527_v17  ;;  %364 = vmatpush1.msra.mxu1 %v529_v18  ;;  %v519_v25 = vld [vmem:[%s720_s1 + $0x20] sm:$0xff]  ;;  %v521_v26 = vld [vmem:[%s720_s1 + $0x30] sm:$0xff]  ;;  %v516_v27 = vld [vmem:[%s720_s1 + $0x8] sm:$0xff] }
   0xe   :  { %294 = vmatprep.subr.mxu0 %v524_v19  ;;  %365 = vmatprep.subr.mxu1 %v526_v20  ;;  %v518_v28 = vld [vmem:[%s720_s1 + $0x18] sm:$0xff]  ;;  %v18_v29 = vld [vmem:[%s720_s1] sm:$0xff]  ;;  %v517_v30 = vld [vmem:[%s720_s1 + $0x10] sm:$0xff] }
   0xf   :  { %295 = vmatpush1.msra.mxu0 %v523_v21  ;;  %366 = vmatpush1.msra.mxu1 %v525_v22  ;;  %v237_v31 = vld [vmem:[%s719_s0] sm:$0x1]  ;;  %v238_v32 = vld [vmem:[%s719_s0 + $0x1] sm:$0x3]  ;;  %v239_v51 = vld [vmem:[%s719_s0 + $0x8] sm:$0xff]  ;;  %s592_s0 = smov [#allocation7]  }
  0x10   :  { %296 = vmatprep.subr.mxu0 %v520_v23  ;;  %367 = vmatprep.subr.mxu1 %v522_v24  ;;  %v463_v48 = vrot.slane %v238_v32, 1 }
  0x11   :  { %297 = vmatpush1.msra.mxu0 %v519_v25  ;;  %368 = vmatpush1.msra.mxu1 %v521_v26 }
  0x12   :  { %298 = vmatprep.subr.mxu0 %v516_v27  ;;  %369 = vmatprep.subr.mxu1 %v518_v28 }
  0x13   :  { %299 = vmatpush1.msra.mxu0 %v18_v29  ;;  %370 = vmatpush1.msra.mxu1 %v517_v30 }
  0x14   :  { %535 = vmatmul.mubr.msk.f32.vlgmr.msra.gmra.mxu0 %vm265_vm1, %v236_v10  ;;  %536 = vmatmul.mubr.msk.f32.vlgmr.msra.gmra.mxu1 %vm265_vm1, %v236_v10 }
  0x15   :  { %431 = vrot.lane.b32.xlu1 %v237_v31, %s591_s12 }
  0x19   :  { %436 = vrot.lane.b32.xlu1 %v238_v32, %s591_s12 }
  0x80   :  { %v263_v33 = vpop.permute.xlu0 %262 }
  0x87   :  { %v432_v49 = vpop.permute.xlu1 %431 }
  0x8b   :  { %v437_v50 = vpop.permute.xlu1 %436 }
  0xd4   :  { %v334_v34 = vpop.f32.mrf.mxu0  ;;  %v405_v35 = vpop.f32.mrf.mxu1 }
  0xd5   :  { %v335_v36 = vadd.f32 %v334_v34, %v263_v33  ;;  %v406_v37 = vadd.f32 %v405_v35, %v263_v33 }
  0xd6   :  { %v336_v38 = vpop.f32.mrf.mxu0  ;;  %v407_v39 = vpop.f32.mrf.mxu1 }
  0xd7   :  { %v410_v40 = vmax.f32 %v335_v36, 0.0  ;;  %v412_v41 = vmax.f32 %v406_v37, 0.0  ;;  %v337_v42 = vadd.f32 %v336_v38, %v263_v33  ;;  %v408_v43 = vadd.f32 %v407_v39, %v263_v33 }
  0xd9   :  { %414 = vst [vmem:[%s722_s3] sm:$0xff] %v410_v40  ;;  %537 = vst [vmem:[%s722_s3 + $0x10] sm:$0xff] %v412_v41  ;;  %v411_v44 = vmax.f32 %v337_v42, 0.0  ;;  %v413_v45 = vmax.f32 %v408_v43, 0.0 }
  0xdb   :  { %415 = vst [vmem:[%s722_s3 + $0x8] sm:$0xff] %v411_v44  ;;  %538 = vst [vmem:[%s722_s3 + $0x18] sm:$0xff] %v413_v45  ;;  %v449_v46 = vadd.f32 %v413_v45, %v412_v41  ;;  %v416_v47 = vadd.f32 %v411_v44, %v410_v40  ;;  %s492_s3 = sshll.u32 %s592_s0, 4  ;;  %s493_s3 = int_to_ptr.vmem [resolvable:$true] %s492_s3 }
  0xdc   :  { %s545_s24 = scalar_lea.vmem %s493_s3, 16  ;;  %s549_s25 = scalar_lea.vmem %s493_s3, 32 }
  0xdd   :  { %450 = vadd.xlane.f32.xlu1 %v449_v46  ;;  %417 = vadd.xlane.f32.xlu0 %v416_v47  ;;  %p546_p0 = scmp.ne.s32.totalorder %s493_s3, %s545_s24  ;;  %p550_p1 = scmp.lt.s32.totalorder %s493_s3, %s493_s3 }
  0xde   :  { %p551_p2 = scmp.lt.s32.totalorder %s549_s25, %s545_s24 }
  0xe0   :  { %p552_p3 = por %p551_p2, %p550_p1 }
  0xe2   :  { %p553_p4 = pnand %p552_p3, %p546_p0 }
  0xee   :  { %464 = vrot.lane.b32.xlu1 %v463_v48, %s591_s12 }
 0x166   :  { %v451_v52 = vpop.xlane.xlu1 %450  ;;  %v418_v53 = vpop.xlane.xlu0 %417 }
 0x167   :  { %v452_v54 = vmul.f32 0.00390625, %v451_v52  ;;  %v419_v55 = vmul.f32 0.00390625, %v418_v53 }
 0x169   :  { %v454_v56 = vmul.f32 %v452_v54, %v239_v51  ;;  %v421_v57 = vmul.f32 %v419_v55, %v239_v51  ;;  %v453_v58 = vadd.f32 %v452_v54, %v419_v55 }
 0x16a   :  { %v465_v15 = vpop.permute.xlu1 %464 }
 0x16b   :  { %v455_v59 = vsel %vm422_vm2, %v454_v56, 0.0  ;;  %v423_v60 = vsel %vm422_vm2, %v421_v57, 0.0  ;;  %v473_v61 = vrot.slane %v453_v58, 4 }
 0x16c   :  { %v456_v62 = vrot.slane %v455_v59, 4  ;;  %v424_v63 = vrot.slane %v423_v60, 4 }
 0x16d   :  { %v474_v0 = vadd.f32 %v473_v61, %v453_v58 }
 0x16e   :  { %v457_v1 = vadd.f32 %v456_v62, %v455_v59  ;;  %v425_v2 = vadd.f32 %v424_v63, %v423_v60 }
 0x16f   :  { %v475_v3 = vrot.slane %v474_v0, 2 }
 0x170   :  { %v458_v4 = vrot.slane %v457_v1, 2  ;;  %v426_v5 = vrot.slane %v425_v2, 2 }
 0x171   :  { %v476_v6 = vadd.f32 %v475_v3, %v474_v0 }
 0x172   :  { %v427_v7 = vadd.f32 %v426_v5, %v425_v2  ;;  %v459_v8 = vadd.f32 %v458_v4, %v457_v1 }
 0x173   :  { %v477_v9 = vrot.slane %v476_v6, 1 }
 0x174   :  { %v460_v10 = vrot.slane %v459_v8, 1  ;;  %v428_v11 = vrot.slane %v427_v7, 1 }
 0x175   :  { %v478_v12 = vadd.f32 %v477_v9, %v476_v6 }
 0x176   :  { %v461_v13 = vadd.f32 %v460_v10, %v459_v8  ;;  %v429_v14 = vadd.f32 %v428_v11, %v427_v7 }
 0x177   :  { %v479_v16 = vmul.f32 0.0625, %v478_v12 }
 0x178   :  { %v462_v17 = vadd.f32 %v461_v13, %v432_v49  ;;  %v434_v18 = vadd.f32 %v432_v49, %v429_v14 }
 0x179   :  { %481 = vst.msk [vmem:[#allocation7] sm:$0x1] %vm480_vm3, %v479_v16 }
 0x17a   :  { %v467_v19 = vsub.f32 %v462_v17, %v465_v15  ;;  %v439_v20 = vsub.f32 %v434_v18, %v437_v50 }
 0x17c   :  { %v468_v21 = vmul.f32 %v467_v19, %v467_v19  ;;  %v440_v22 = vmul.f32 %v439_v20, %v439_v20 }
 0x17e   :  { %v469_v23 = vsel %vm441_vm4, %v468_v21, 0.0  ;;  %v442_v24 = vsel %vm441_vm4, %v440_v22, 0.0 }
 0x17f   :  { %470 = vadd.xlane.f32.xlu0 %v469_v23  ;;  %443 = vadd.xlane.f32.xlu1 %v442_v24 }
 0x180   :  { %556 = shalt.err (!%p553_p4)
}
 0x181   :  { %495 = dma.vmem_to_hbm [thread:$0]  %s493_s3, 16, %s723_s4, [#allocation8]  }
 0x182   :  { %s593_s27 = smov [#allocation9]  }
 0x183   :  { %s502_s28 = sshll.u32 %s593_s27, 4  ;;  %s503_s28 = int_to_ptr.vmem [resolvable:$true] %s502_s28 }
 0x184   :  { %s565_s29 = scalar_lea.vmem %s503_s28, 16  ;;  %s569_s30 = scalar_lea.vmem %s503_s28, 32 }
 0x185   :  { %p566_p5 = scmp.ne.s32.totalorder %s503_s28, %s565_s29  ;;  %p570_p6 = scmp.lt.s32.totalorder %s503_s28, %s503_s28 }
 0x186   :  { %p571_p7 = scmp.lt.s32.totalorder %s569_s30, %s565_s29 }
 0x188   :  { %p572_p8 = por %p571_p7, %p570_p6 }
 0x18a   :  { %p573_p9 = pnand %p572_p8, %p566_p5 }
 0x208   :  { %v444_v25 = vpop.xlane.xlu1 %443  ;;  %v471_v26 = vpop.xlane.xlu0 %470 }
 0x209   :  { %v472_v27 = vadd.f32 %v471_v26, %v444_v25 }
 0x20b   :  { %v482_v28 = vmul.f32 0.05, %v472_v27 }
 0x20d   :  { %483 = vst.msk [vmem:[#allocation9] sm:$0x1] %vm480_vm3, %v482_v28 }
 0x20e   :  { %576 = shalt.err (!%p573_p9)
}
 0x20f   :  { %505 = dma.vmem_to_hbm [thread:$0]  %s503_s28, 16, %s724_s5, [#allocation10]  }
 0x210   :  { %585 = dma.done.wait [#allocation8], 16  }
 0x211   :  { %586 = vsyncadd [#allocation8], 4294967280 }
 0x212   :  { %587 = dma.done.wait [#allocation10], 16  }
 0x213   :  { %588 = vsyncadd [#allocation10], 4294967280 }
 0x214   :  { %514 = vsyncpa [#allocation8], 1 }
 0x215   :  { %515 = vsyncpa [#allocation10], 1 }

</bundles_post_ra>
